<compile_context>
chip_gen: v5e
topology: v5e:2x2
jax: 0.10.0
libtpu: 0.0.40
codegen_flags: <defaults>
</compile_context>

<pallas_src>
import functools

import jax
import jax.numpy as jnp
from jax import lax
from jax.experimental import pallas as pl
from jax.experimental.pallas import tpu as pltpu


# ----------------------------------------------------------------------------
# Tile size helper: largest tile <= target that divides dim and is `align`-
# aligned (TPU (8,128) block constraint); falls back to the full dim, which is
# always legal.
# ----------------------------------------------------------------------------
def _pick_tile(dim, target, align):
    if dim <= target:
        return dim
    t = (target // align) * align
    while t >= align:
        if dim % t == 0:
            return t
        t -= align
    return dim


# ----------------------------------------------------------------------------
# Tiled linear kernels:  y = x @ w (+ b),  w pre-transposed to (Cin, Cout)
# ----------------------------------------------------------------------------
def _linear_kernel(x_ref, w_ref, o_ref, acc_ref):
    @pl.when(pl.program_id(2) == 0)
    def _():
        acc_ref[...] = jnp.zeros_like(acc_ref)

    acc_ref[...] += jnp.dot(x_ref[...], w_ref[...],
                            preferred_element_type=jnp.float32)

    @pl.when(pl.program_id(2) == pl.num_programs(2) - 1)
    def _():
        o_ref[...] = acc_ref[...].astype(o_ref.dtype)


def _linear_bias_kernel(x_ref, w_ref, b_ref, o_ref, acc_ref):
    @pl.when(pl.program_id(2) == 0)
    def _():
        acc_ref[...] = jnp.zeros_like(acc_ref)

    acc_ref[...] += jnp.dot(x_ref[...], w_ref[...],
                            preferred_element_type=jnp.float32)

    @pl.when(pl.program_id(2) == pl.num_programs(2) - 1)
    def _():
        o_ref[...] = (acc_ref[...] + b_ref[...].astype(jnp.float32)
                      ).astype(o_ref.dtype)


def pallas_linear(x2d, w_t, bias=None, *, tm=256, tn=256, tk=512):
    """x2d: (M, Cin), w_t: (Cin, Cout), bias: (Cout,) or None -> (M, Cout)."""
    M, Cin = x2d.shape
    Cout = w_t.shape[1]
    bm = _pick_tile(M, tm, 8)
    bn = _pick_tile(Cout, tn, 128)
    bk = _pick_tile(Cin, tk, 128)
    grid = (M // bm, Cout // bn, Cin // bk)

    x_spec = pl.BlockSpec((bm, bk), lambda i, j, k: (i, k))
    w_spec = pl.BlockSpec((bk, bn), lambda i, j, k: (k, j))
    o_spec = pl.BlockSpec((bm, bn), lambda i, j, k: (i, j))
    cparams = pltpu.CompilerParams(
        dimension_semantics=("parallel", "parallel", "arbitrary"))
    out_shape = jax.ShapeDtypeStruct((M, Cout), x2d.dtype)
    scratch = [pltpu.VMEM((bm, bn), jnp.float32)]

    if bias is None:
        return pl.pallas_call(
            _linear_kernel,
            out_shape=out_shape,
            grid_spec=pltpu.PrefetchScalarGridSpec(
                num_scalar_prefetch=0, grid=grid,
                in_specs=[x_spec, w_spec],
                out_specs=o_spec,
                scratch_shapes=scratch),
            compiler_params=cparams,
        )(x2d, w_t)

    b2d = bias.reshape(1, Cout)
    b_spec = pl.BlockSpec((1, bn), lambda i, j, k: (0, j))
    return pl.pallas_call(
        _linear_bias_kernel,
        out_shape=out_shape,
        grid_spec=pltpu.PrefetchScalarGridSpec(
            num_scalar_prefetch=0, grid=grid,
            in_specs=[x_spec, w_spec, b_spec],
            out_specs=o_spec,
            scratch_shapes=scratch),
        compiler_params=cparams,
    )(x2d, w_t, b2d)


# ----------------------------------------------------------------------------
# Fused q/k/v projection (self-attention path): one pass over x, 3 outputs.
# ----------------------------------------------------------------------------
def _qkv_proj_kernel(x_ref, wq_ref, wk_ref, wv_ref,
                     q_ref, k_ref, v_ref,
                     accq, acck, accv):
    kk = pl.program_id(2)

    @pl.when(kk == 0)
    def _():
        accq[...] = jnp.zeros_like(accq)
        acck[...] = jnp.zeros_like(acck)
        accv[...] = jnp.zeros_like(accv)

    x = x_ref[...]  # loaded once, reused for the three matmuls
    accq[...] += jnp.dot(x, wq_ref[...], preferred_element_type=jnp.float32)
    acck[...] += jnp.dot(x, wk_ref[...], preferred_element_type=jnp.float32)
    accv[...] += jnp.dot(x, wv_ref[...], preferred_element_type=jnp.float32)

    @pl.when(kk == pl.num_programs(2) - 1)
    def _():
        q_ref[...] = accq[...].astype(q_ref.dtype)
        k_ref[...] = acck[...].astype(k_ref.dtype)
        v_ref[...] = accv[...].astype(v_ref.dtype)


def pallas_qkv_proj(x2d, wq_t, wk_t, wv_t, *, tm=256, tn=256, tk=512):
    """x2d: (M, Cin); w*_t: (Cin, AHD) -> (q, k, v) each (M, AHD)."""
    M, Cin = x2d.shape
    Cout = wq_t.shape[1]
    bm = _pick_tile(M, tm, 8)
    bn = _pick_tile(Cout, tn, 128)
    bk = _pick_tile(Cin, tk, 128)
    grid = (M // bm, Cout // bn, Cin // bk)

    x_spec = pl.BlockSpec((bm, bk), lambda i, j, k: (i, k))
    w_spec = pl.BlockSpec((bk, bn), lambda i, j, k: (k, j))
    o_spec = pl.BlockSpec((bm, bn), lambda i, j, k: (i, j))
    out_sd = jax.ShapeDtypeStruct((M, Cout), x2d.dtype)

    return pl.pallas_call(
        _qkv_proj_kernel,
        out_shape=(out_sd, out_sd, out_sd),
        grid_spec=pltpu.PrefetchScalarGridSpec(
            num_scalar_prefetch=0, grid=grid,
            in_specs=[x_spec, w_spec, w_spec, w_spec],
            out_specs=[o_spec, o_spec, o_spec],
            scratch_shapes=[pltpu.VMEM((bm, bn), jnp.float32)] * 3),
        compiler_params=pltpu.CompilerParams(
            dimension_semantics=("parallel", "parallel", "arbitrary")),
    )(x2d, wq_t, wk_t, wv_t)


# ----------------------------------------------------------------------------
# Attention kernel: per-batch lane-dense (N, C) slabs, heads split in-register.
# ----------------------------------------------------------------------------
def _attn_kernel(q_ref, k_ref, v_ref, o_ref, *, scale, num_heads, head_dim):
    q = q_ref[...].astype(jnp.float32) * scale   # (Nq, H*Dh)
    k = k_ref[...].astype(jnp.float32)           # (Nk, H*Dh)
    v = v_ref[...]                               # (Nk, H*Dh)

    outs = []
    for h in range(num_heads):                   # static unroll; H is small
        lo, hi = h * head_dim, (h + 1) * head_dim
        qh = q[:, lo:hi]
        kh = k[:, lo:hi]
        vh = v[:, lo:hi]
        # q @ k^T without materializing a transpose: contract the last dims.
        s = lax.dot_general(qh, kh, (((1,), (1,)), ((), ())),
                            preferred_element_type=jnp.float32)   # (Nq, Nk)
        m = jnp.max(s, axis=-1, keepdims=True)
        p = jnp.exp(s - m)
        denom = jnp.sum(p, axis=-1, keepdims=True)
        p = p * pl.reciprocal(denom, approx=True)                 # EUP vrcp
        outs.append(jnp.dot(p.astype(vh.dtype), vh,
                            preferred_element_type=jnp.float32))  # (Nq, Dh)

    # Single lane-dense (Nq, H*Dh) store.
    o_ref[...] = jnp.concatenate(outs, axis=-1).astype(o_ref.dtype)
    # TODO(synk): for long sequences convert to online-softmax (flash) form
    # with a kv grid axis instead of materializing full (Nq, Nk) score tiles.


def pallas_attention(q, k, v, *, scale, num_heads):
    """q: (B, Nq, AHD), k/v: (B, Nk, AHD) -> (B, Nq, AHD)."""
    B, Nq, AHD = q.shape
    Nk = k.shape[1]
    head_dim = AHD // num_heads
    kern = functools.partial(_attn_kernel, scale=scale,
                             num_heads=num_heads, head_dim=head_dim)
    return pl.pallas_call(
        kern,
        out_shape=jax.ShapeDtypeStruct((B, Nq, AHD), q.dtype),
        grid_spec=pltpu.PrefetchScalarGridSpec(
            num_scalar_prefetch=0, grid=(B,),
            in_specs=[
                pl.BlockSpec((None, Nq, AHD), lambda b: (b, 0, 0)),
                pl.BlockSpec((None, Nk, AHD), lambda b: (b, 0, 0)),
                pl.BlockSpec((None, Nk, AHD), lambda b: (b, 0, 0)),
            ],
            out_specs=pl.BlockSpec((None, Nq, AHD), lambda b: (b, 0, 0)),
        ),
        compiler_params=pltpu.CompilerParams(
            dimension_semantics=("parallel",)),
    )(q, k, v)


# ----------------------------------------------------------------------------
# Parameter prep (one-time, outside the hot path): transpose PyTorch (out, in)
# Linear weights to (in, out) so the kernels never pay a per-call transpose.
# ----------------------------------------------------------------------------
def prepare_params(params):
    return {
        "q_wt": jnp.asarray(params["q_w"]).T,
        "k_wt": jnp.asarray(params["k_w"]).T,
        "v_wt": jnp.asarray(params["v_w"]).T,
        "proj_wt": jnp.asarray(params["proj_w"]).T,
        "proj_b": jnp.asarray(params["proj_b"]),
    }


# ----------------------------------------------------------------------------
# CrossAttention forward (qkv_bias=False path; dropout probs are 0.0)
# ----------------------------------------------------------------------------
def cross_attention_forward(prep, x, k=None, v=None, *, num_heads):
    B, N, C = x.shape
    all_head_dim = prep["q_wt"].shape[1]
    head_dim = all_head_dim // num_heads
    scale = head_dim ** (-0.5)

    if k is None:
        # Self-attention: fused q/k/v projection, x read from HBM once.
        q2, k2, v2 = pallas_qkv_proj(
            x.reshape(B * N, C), prep["q_wt"], prep["k_wt"], prep["v_wt"])
        N_k = N
        N_v = N
    else:
        N_k = k.shape[1]
        N_v = v.shape[1]
        q2 = pallas_linear(x.reshape(B * N, C), prep["q_wt"])
        k2 = pallas_linear(k.reshape(B * N_k, C), prep["k_wt"])
        v2 = pallas_linear(v.reshape(B * N_v, C), prep["v_wt"])

    # Free reshapes only (no HBM transposes): heads are split inside the
    # attention kernel via lane slices, output comes back lane-dense (B,N,AHD).
    qh = q2.reshape(B, N, all_head_dim)
    kh = k2.reshape(B, N_k, all_head_dim)
    vh = v2.reshape(B, N_v, all_head_dim)

    o = pallas_attention(qh, kh, vh, scale=scale, num_heads=num_heads)

    out = pallas_linear(o.reshape(B * N, all_head_dim), prep["proj_wt"],
                        bias=prep["proj_b"])
    return out.reshape(B, N, C)


# ----------------------------------------------------------------------------
# Pure-JAX reference for verification (mirrors the PyTorch module)
# ----------------------------------------------------------------------------
def reference_forward(params, x, k=None, v=None, *, num_heads):
    B, N, C = x.shape
    if k is None:
        k = x
        v = x
    N_k, N_v = k.shape[1], v.shape[1]
    all_head_dim = params["q_w"].shape[0]
    head_dim = all_head_dim // num_heads
    scale = head_dim ** (-0.5)

    q = x @ params["q_w"].T
    kk = k @ params["k_w"].T
    vv = v @ params["v_w"].T
    q = q.reshape(B, N, num_heads, head_dim).transpose(0, 2, 1, 3) * scale
    kk = kk.reshape(B, N_k, num_heads, head_dim).transpose(0, 2, 1, 3)
    vv = vv.reshape(B, N_v, num_heads, head_dim).transpose(0, 2, 1, 3)
    attn = q @ jnp.swapaxes(kk, -2, -1)
    attn = jax.nn.softmax(attn, axis=-1)
    out = (attn @ vv).transpose(0, 2, 1, 3).reshape(B, N, all_head_dim)
    return out @ params["proj_w"].T + params["proj_b"]


if __name__ == "__main__":
    # small shapes consistent with the module
    B, N, dim, num_heads = 2, 8, 32, 8
    head_dim = dim // num_heads
    all_head_dim = head_dim * num_heads

    key = jax.random.PRNGKey(0)
    kx, kq, kk_, kv, kp, kb, kc = jax.random.split(key, 7)

    x = jax.random.normal(kx, (B, N, dim), dtype=jnp.float32)

    # deterministic synthetic parameters (PyTorch Linear weight shape: (out, in))
    params = {
        "q_w": jax.random.normal(kq, (all_head_dim, dim), jnp.float32) * 0.1,
        "k_w": jax.random.normal(kk_, (all_head_dim, dim), jnp.float32) * 0.1,
        "v_w": jax.random.normal(kv, (all_head_dim, dim), jnp.float32) * 0.1,
        "proj_w": jax.random.normal(kp, (dim, all_head_dim), jnp.float32) * 0.1,
        "proj_b": jax.random.normal(kb, (dim,), jnp.float32) * 0.1,
    }
    prep = prepare_params(params)  # one-time weight layout prep

    # --- self-attention path (k = v = x), the module default ---
    out = cross_attention_forward(prep, x, num_heads=num_heads)
    out = jax.block_until_ready(out)
    ref = reference_forward(params, x, num_heads=num_heads)
    assert out.shape == (B, N, dim)
    err = float(jnp.max(jnp.abs(out - ref)))
    # tolerance loosened slightly vs exact math because of the EUP approx
    # reciprocal in the softmax normalization
    assert err < 2e-3, f"self-attention mismatch vs reference: {err}"

    # --- cross-attention path (explicit k/v, different sequence length) ---
    N_kv = 16
    kv_in = jax.random.normal(kc, (B, N_kv, dim), dtype=jnp.float32)
    out_c = cross_attention_forward(prep, x, k=kv_in, v=kv_in,
                                    num_heads=num_heads)
    out_c = jax.block_until_ready(out_c)
    ref_c = reference_forward(params, x, k=kv_in, v=kv_in,
                              num_heads=num_heads)
    err_c = float(jnp.max(jnp.abs(out_c - ref_c)))
    assert err_c < 2e-3, f"cross-attention mismatch vs reference: {err_c}"

    print("KERNEL_OK")
</pallas_src>

<mosaic_0001>
module attributes {stable_mosaic.version = 11 : i64} {
  func.func @_qkv_proj_kernel(%arg0: i32, %arg1: i32, %arg2: i32, %arg3: memref<16x32xf32, #tpu.memory_space<vmem>>, %arg4: memref<32x32xf32, #tpu.memory_space<vmem>>, %arg5: memref<32x32xf32, #tpu.memory_space<vmem>>, %arg6: memref<32x32xf32, #tpu.memory_space<vmem>>, %arg7: memref<16x32xf32, #tpu.memory_space<vmem>>, %arg8: memref<16x32xf32, #tpu.memory_space<vmem>>, %arg9: memref<16x32xf32, #tpu.memory_space<vmem>>, %arg10: memref<16x32xf32, #tpu.memory_space<vmem>>, %arg11: memref<16x32xf32, #tpu.memory_space<vmem>>, %arg12: memref<16x32xf32, #tpu.memory_space<vmem>>) attributes {dimension_semantics = [#tpu.dimension_semantics<parallel>, #tpu.dimension_semantics<parallel>, #tpu.dimension_semantics<arbitrary>], iteration_bounds = array<i64: 1, 1, 1>, scalar_prefetch = 0 : i64, scratch_operands = 3 : i64, tpu.core_type = #tpu.core_type<tc>, window_params = [{transform_indices = @transform_0, window_bounds = array<i64: 16, 32>}, {transform_indices = @transform_1, window_bounds = array<i64: 32, 32>}, {transform_indices = @transform_2, window_bounds = array<i64: 32, 32>}, {transform_indices = @transform_3, window_bounds = array<i64: 32, 32>}, {transform_indices = @transform_4, window_bounds = array<i64: 16, 32>}, {transform_indices = @transform_5, window_bounds = array<i64: 16, 32>}, {transform_indices = @transform_6, window_bounds = array<i64: 16, 32>}]} {
    %c0_i32 = arith.constant 0 : i32
    %0 = arith.cmpi eq, %arg2, %c0_i32 : i32
    %1 = arith.extui %0 : i1 to i32
    %c0_i32_0 = arith.constant 0 : i32
    %2 = arith.cmpi ne, %1, %c0_i32_0 : i32
    scf.if %2 {
      %cst_24 = arith.constant 0.000000e+00 : f32
      %22 = vector.broadcast %cst_24 : f32 to vector<16x32xf32>
      %c0_25 = arith.constant 0 : index
      %c0_26 = arith.constant 0 : index
      %23 = vector.load %arg10[%c0_25, %c0_26] : memref<16x32xf32, #tpu.memory_space<vmem>>, vector<16x32xf32>
      tpu.vector_store %arg10[%c0_25, %c0_26], %22 {strides = array<i32>} : memref<16x32xf32, #tpu.memory_space<vmem>>, vector<16x32xf32>,
      %cst_27 = arith.constant 0.000000e+00 : f32
      %24 = vector.broadcast %cst_27 : f32 to vector<16x32xf32>
      %c0_28 = arith.constant 0 : index
      %c0_29 = arith.constant 0 : index
      %25 = vector.load %arg11[%c0_28, %c0_29] : memref<16x32xf32, #tpu.memory_space<vmem>>, vector<16x32xf32>
      tpu.vector_store %arg11[%c0_28, %c0_29], %24 {strides = array<i32>} : memref<16x32xf32, #tpu.memory_space<vmem>>, vector<16x32xf32>,
      %cst_30 = arith.constant 0.000000e+00 : f32
      %26 = vector.broadcast %cst_30 : f32 to vector<16x32xf32>
      %c0_31 = arith.constant 0 : index
      %c0_32 = arith.constant 0 : index
      %27 = vector.load %arg12[%c0_31, %c0_32] : memref<16x32xf32, #tpu.memory_space<vmem>>, vector<16x32xf32>
      tpu.vector_store %arg12[%c0_31, %c0_32], %26 {strides = array<i32>} : memref<16x32xf32, #tpu.memory_space<vmem>>, vector<16x32xf32>,
    } else {
    }
    %c0 = arith.constant 0 : index
    %c0_1 = arith.constant 0 : index
    %3 = vector.load %arg3[%c0, %c0_1] : memref<16x32xf32, #tpu.memory_space<vmem>>, vector<16x32xf32>
    %c0_2 = arith.constant 0 : index
    %c0_3 = arith.constant 0 : index
    %4 = vector.load %arg10[%c0_2, %c0_3] : memref<16x32xf32, #tpu.memory_space<vmem>>, vector<16x32xf32>
    %c0_4 = arith.constant 0 : index
    %c0_5 = arith.constant 0 : index
    %5 = vector.load %arg4[%c0_4, %c0_5] : memref<32x32xf32, #tpu.memory_space<vmem>>, vector<32x32xf32>
    %cst = arith.constant dense<0.000000e+00> : vector<16x32xf32>
    %6 = tpu.matmul %3, %5, %cst {dimension_numbers = #tpu.dot_dimension_numbers<[1], [0], [0], [1], [0, 0, 1, 1], [], []>} : vector<16x32xf32>, vector<32x32xf32>, vector<16x32xf32> -> vector<16x32xf32>
    %7 = arith.addf %4, %6 : vector<16x32xf32>
    %c0_6 = arith.constant 0 : index
    %c0_7 = arith.constant 0 : index
    %8 = vector.load %arg10[%c0_6, %c0_7] : memref<16x32xf32, #tpu.memory_space<vmem>>, vector<16x32xf32>
    tpu.vector_store %arg10[%c0_6, %c0_7], %7 {strides = array<i32>} : memref<16x32xf32, #tpu.memory_space<vmem>>, vector<16x32xf32>,
    %c0_8 = arith.constant 0 : index
    %c0_9 = arith.constant 0 : index
    %9 = vector.load %arg11[%c0_8, %c0_9] : memref<16x32xf32, #tpu.memory_space<vmem>>, vector<16x32xf32>
    %c0_10 = arith.constant 0 : index
    %c0_11 = arith.constant 0 : index
    %10 = vector.load %arg5[%c0_10, %c0_11] : memref<32x32xf32, #tpu.memory_space<vmem>>, vector<32x32xf32>
    %cst_12 = arith.constant dense<0.000000e+00> : vector<16x32xf32>
    %11 = tpu.matmul %3, %10, %cst_12 {dimension_numbers = #tpu.dot_dimension_numbers<[1], [0], [0], [1], [0, 0, 1, 1], [], []>} : vector<16x32xf32>, vector<32x32xf32>, vector<16x32xf32> -> vector<16x32xf32>
    %12 = arith.addf %9, %11 : vector<16x32xf32>
    %c0_13 = arith.constant 0 : index
    %c0_14 = arith.constant 0 : index
    %13 = vector.load %arg11[%c0_13, %c0_14] : memref<16x32xf32, #tpu.memory_space<vmem>>, vector<16x32xf32>
    tpu.vector_store %arg11[%c0_13, %c0_14], %12 {strides = array<i32>} : memref<16x32xf32, #tpu.memory_space<vmem>>, vector<16x32xf32>,
    %c0_15 = arith.constant 0 : index
    %c0_16 = arith.constant 0 : index
    %14 = vector.load %arg12[%c0_15, %c0_16] : memref<16x32xf32, #tpu.memory_space<vmem>>, vector<16x32xf32>
    %c0_17 = arith.constant 0 : index
    %c0_18 = arith.constant 0 : index
    %15 = vector.load %arg6[%c0_17, %c0_18] : memref<32x32xf32, #tpu.memory_space<vmem>>, vector<32x32xf32>
    %cst_19 = arith.constant dense<0.000000e+00> : vector<16x32xf32>
    %16 = tpu.matmul %3, %15, %cst_19 {dimension_numbers = #tpu.dot_dimension_numbers<[1], [0], [0], [1], [0, 0, 1, 1], [], []>} : vector<16x32xf32>, vector<32x32xf32>, vector<16x32xf32> -> vector<16x32xf32>
    %17 = arith.addf %14, %16 : vector<16x32xf32>
    %c0_20 = arith.constant 0 : index
    %c0_21 = arith.constant 0 : index
    %18 = vector.load %arg12[%c0_20, %c0_21] : memref<16x32xf32, #tpu.memory_space<vmem>>, vector<16x32xf32>
    tpu.vector_store %arg12[%c0_20, %c0_21], %17 {strides = array<i32>} : memref<16x32xf32, #tpu.memory_space<vmem>>, vector<16x32xf32>,
    %c0_i32_22 = arith.constant 0 : i32
    %19 = arith.cmpi eq, %arg2, %c0_i32_22 : i32
    %20 = arith.extui %19 : i1 to i32
    %c0_i32_23 = arith.constant 0 : i32
    %21 = arith.cmpi ne, %20, %c0_i32_23 : i32
    scf.if %21 {
      %c0_24 = arith.constant 0 : index
      %c0_25 = arith.constant 0 : index
      %22 = vector.load %arg10[%c0_24, %c0_25] : memref<16x32xf32, #tpu.memory_space<vmem>>, vector<16x32xf32>
      %c0_26 = arith.constant 0 : index
      %c0_27 = arith.constant 0 : index
      %23 = vector.load %arg7[%c0_26, %c0_27] : memref<16x32xf32, #tpu.memory_space<vmem>>, vector<16x32xf32>
      tpu.vector_store %arg7[%c0_26, %c0_27], %22 {strides = array<i32>} : memref<16x32xf32, #tpu.memory_space<vmem>>, vector<16x32xf32>,
      %c0_28 = arith.constant 0 : index
      %c0_29 = arith.constant 0 : index
      %24 = vector.load %arg11[%c0_28, %c0_29] : memref<16x32xf32, #tpu.memory_space<vmem>>, vector<16x32xf32>
      %c0_30 = arith.constant 0 : index
      %c0_31 = arith.constant 0 : index
      %25 = vector.load %arg8[%c0_30, %c0_31] : memref<16x32xf32, #tpu.memory_space<vmem>>, vector<16x32xf32>
      tpu.vector_store %arg8[%c0_30, %c0_31], %24 {strides = array<i32>} : memref<16x32xf32, #tpu.memory_space<vmem>>, vector<16x32xf32>,
      %c0_32 = arith.constant 0 : index
      %c0_33 = arith.constant 0 : index
      %26 = vector.load %arg12[%c0_32, %c0_33] : memref<16x32xf32, #tpu.memory_space<vmem>>, vector<16x32xf32>
      %c0_34 = arith.constant 0 : index
      %c0_35 = arith.constant 0 : index
      %27 = vector.load %arg9[%c0_34, %c0_35] : memref<16x32xf32, #tpu.memory_space<vmem>>, vector<16x32xf32>
      tpu.vector_store %arg9[%c0_34, %c0_35], %26 {strides = array<i32>} : memref<16x32xf32, #tpu.memory_space<vmem>>, vector<16x32xf32>,
    } else {
    }
    return
  }
  func.func @transform_0(%arg0: i32, %arg1: i32, %arg2: i32) -> (i32, i32) {
    %c0_i32 = arith.constant 0 : i32
    return %arg0, %arg2 : i32, i32
  }
  func.func @transform_1(%arg0: i32, %arg1: i32, %arg2: i32) -> (i32, i32) {
    %c0_i32 = arith.constant 0 : i32
    return %arg2, %arg1 : i32, i32
  }
  func.func @transform_2(%arg0: i32, %arg1: i32, %arg2: i32) -> (i32, i32) {
    %c0_i32 = arith.constant 0 : i32
    return %arg2, %arg1 : i32, i32
  }
  func.func @transform_3(%arg0: i32, %arg1: i32, %arg2: i32) -> (i32, i32) {
    %c0_i32 = arith.constant 0 : i32
    return %arg2, %arg1 : i32, i32
  }
  func.func @transform_4(%arg0: i32, %arg1: i32, %arg2: i32) -> (i32, i32) {
    %c0_i32 = arith.constant 0 : i32
    return %arg0, %arg1 : i32, i32
  }
  func.func @transform_5(%arg0: i32, %arg1: i32, %arg2: i32) -> (i32, i32) {
    %c0_i32 = arith.constant 0 : i32
    return %arg0, %arg1 : i32, i32
  }
  func.func @transform_6(%arg0: i32, %arg1: i32, %arg2: i32) -> (i32, i32) {
    %c0_i32 = arith.constant 0 : i32
    return %arg0, %arg1 : i32, i32
  }
}

</mosaic_0001>

<bundles_post_ra>
// kernel: tpu_custom_call.1
= control target key start
LH: loop header
LB: loop body
LE: loop exit
PB: predicated region body
PF: predicated region fallthrough
CT: control target
= control target key end

     0   :  { %12 = vsyncpa [#allocation6], 0  ;;  %s584_s0 = inlined_call_operand.hbm [shape: f32[16,32], index: 0, kind: input, shape index: {}]   ;;  %s585_s1 = inlined_call_operand.hbm [shape: f32[32,32], index: 1, kind: input, shape index: {}]   ;;  %s586_s2 = inlined_call_operand.hbm [shape: f32[32,32], index: 2, kind: input, shape index: {}]   ;;  %s587_s3 = inlined_call_operand.hbm [shape: f32[32,32], index: 3, kind: input, shape index: {}]   ;;  %s588_s4 = inlined_call_operand.hbm [shape: f32[16,32], index: 4, kind: output, shape index: {0}]   ;;  %s589_s5 = inlined_call_operand.hbm [shape: f32[16,32], index: 5, kind: output, shape index: {1}]   ;;  %s590_s6 = inlined_call_operand.hbm [shape: f32[16,32], index: 6, kind: output, shape index: {2}]  }
   0x1   :  { %13 = vsyncpa [#allocation9], 0 }
   0x2   :  { %14 = vsyncpa [#allocation12], 0 }
   0x3   :  { %15 = vsyncpa [#allocation7], 0 }
   0x4   :  { %16 = vsyncpa [#allocation15], 0  ;;  %s34_s23 = sshll.u32 %s585_s1, 4  ;;  %s473_s24 = smov [#allocation8]   ;;  %s35_s23 = int_to_ptr.hbm [resolvable:$true] %s34_s23 }
   0x5   :  { %s36_s25 = sshll.u32 %s473_s24, 4  ;;  %s21_s28 = sshll.u32 %s584_s0, 4  ;;  %s37_s25 = int_to_ptr.vmem [resolvable:$true] %s36_s25  ;;  %s22_s28 = int_to_ptr.hbm [resolvable:$true] %s21_s28 }
   0x6   :  { %s474_s29 = smov 128   ;;  %s475_s30 = smov 8  }
   0x7   :  { %42 = dma.hbm_to_vmem [thread:$0]  %s35_s23, 512, %s37_s25, [#allocation9], %s474_s29, %s474_s29, %s475_s30  }
   0x8   :  { %s476_s7 = smov [#allocation5]   ;;  %s47_s1 = sshll.u32 %s586_s2, 4  ;;  %s48_s1 = int_to_ptr.hbm [resolvable:$true] %s47_s1 }
   0x9   :  { %s23_s8 = sshll.u32 %s476_s7, 4  ;;  %s60_s12 = sshll.u32 %s587_s3, 4  ;;  %s24_s8 = int_to_ptr.vmem [resolvable:$true] %s23_s8  ;;  %s61_s12 = int_to_ptr.hbm [resolvable:$true] %s60_s12 }
   0xa   :  { %29 = dma.hbm_to_vmem [thread:$0]  %s22_s28, 256, %s24_s8, [#allocation6], %s474_s29, %s474_s29, %s475_s30  }
   0xb   :  { %s477_s13 = smov [#allocation10]   ;;  %s478_s15 = smov [#allocation11]  }
   0xc   :  { %s49_s14 = sshll.u32 %s477_s13, 4  ;;  %s62_s2 = sshll.u32 %s478_s15, 4  ;;  %s50_s14 = int_to_ptr.vmem [resolvable:$true] %s49_s14  ;;  %s63_s2 = int_to_ptr.vmem [resolvable:$true] %s62_s2 }
   0xd   :  { %55 = dma.hbm_to_vmem [thread:$0]  %s48_s1, 512, %s50_s14, [#allocation9], %s474_s29, %s474_s29, %s475_s30  }
   0xe   :  { %68 = dma.hbm_to_vmem [thread:$0]  %s61_s12, 512, %s63_s2, [#allocation12], %s474_s29, %s474_s29, %s475_s30  }
   0xf   :  { %463 = dma.done.wait [#allocation6], 256  }
  0x10   :  { %464 = vsyncadd [#allocation6], 4294967040 }
  0x11   :  { %465 = dma.done.wait [#allocation9], 1024  }
  0x12   :  { %466 = vsyncadd [#allocation9], 4294966272 }
  0x13   :  { %467 = dma.done.wait [#allocation12], 512  }
  0x14   :  { %468 = vsyncadd [#allocation12], 4294966784  ;;  %vm89_vm0 = vcmask 261120   ;;  %v479_v0 = vmov 0.0   ;;  %v176_v1 = vld [vmem:[#allocation11 + $0x18] sm:$0xff]  ;;  %v175_v2 = vld [vmem:[#allocation11 + $0x10] sm:$0xff] }
  0x15   :  { %92 = vst.msk [vmem:[#allocation3] sm:$0xff] %vm89_vm0, %v479_v0  ;;  %189 = vmatpush.msra.mxu2 %v176_v1  ;;  %v143_v3 = vld [vmem:[#allocation10 + $0x18] sm:$0xff]  ;;  %v142_v4 = vld [vmem:[#allocation10 + $0x10] sm:$0xff]  ;;  %v174_v5 = vld [vmem:[#allocation11 + $0x8] sm:$0xff]  ;;  %s480_s3 = smov [#allocation13]   ;;  %s225_s19 = sshll.u32 %s588_s4, 4  ;;  %s226_s19 = int_to_ptr.hbm [resolvable:$true] %s225_s19 }
  0x16   :  { %90 = vst.msk [vmem:[#allocation2] sm:$0xff] %vm89_vm0, %v479_v0  ;;  %156 = vmatpush.msra.mxu1 %v143_v3  ;;  %v103_v6 = vld [vmem:[#allocation8 + $0x18] sm:$0xff]  ;;  %v141_v7 = vld [vmem:[#allocation10 + $0x8] sm:$0xff]  ;;  %v102_v8 = vld [vmem:[#allocation8 + $0x10] sm:$0xff]  ;;  %s223_s16 = sshll.u32 %s480_s3, 4  ;;  %s481_s20 = smov [#allocation14]   ;;  %s224_s16 = int_to_ptr.vmem [resolvable:$true] %s223_s16 }
  0x17   :  { %91 = vst.msk [vmem:[#allocation2 + $0x8] sm:$0xff] %vm89_vm0, %v479_v0  ;;  %190 = vmatpush.msra.mxu2 %v175_v2  ;;  %281 = vmatpush.msra.mxu3 %v103_v6  ;;  %v173_v9 = vld [vmem:[#allocation11] sm:$0xff]  ;;  %v101_v10 = vld [vmem:[#allocation8 + $0x8] sm:$0xff]  ;;  %v96_v11 = vld [vmem:[#allocation5] sm:$0xff]  ;;  %s236_s21 = sshll.u32 %s481_s20, 4  ;;  %s238_s24 = sshll.u32 %s589_s5, 4  ;;  %s237_s21 = int_to_ptr.vmem [resolvable:$true] %s236_s21  ;;  %s239_s24 = int_to_ptr.hbm [resolvable:$true] %s238_s24 }
  0x18   :  { %93 = vst.msk [vmem:[#allocation3 + $0x8] sm:$0xff] %vm89_vm0, %v479_v0  ;;  %157 = vmatpush.msra.mxu1 %v142_v4  ;;  %123 = vmatpush.msra.mxu0 %v103_v6  ;;  %v140_v12 = vld [vmem:[#allocation10] sm:$0xff]  ;;  %v97_v14 = vld [vmem:[#allocation5 + $0x8] sm:$0xff]  ;;  %s482_s4 = smov [#allocation16]   ;;  %s251_s27 = sshll.u32 %s590_s6, 4  ;;  %s252_s27 = int_to_ptr.hbm [resolvable:$true] %s251_s27 }
  0x19   :  { %94 = vst.msk [vmem:[#allocation4] sm:$0xff] %vm89_vm0, %v479_v0  ;;  %191 = vmatpush.msra.mxu2 %v174_v5  ;;  %282 = vmatpush.msra.mxu3 %v102_v8  ;;  %v100_v13 = vld [vmem:[#allocation8] sm:$0xff]  ;;  %s249_s25 = sshll.u32 %s482_s4, 4  ;;  %s250_s25 = int_to_ptr.vmem [resolvable:$true] %s249_s25 }
  0x1a   :  { %95 = vst.msk [vmem:[#allocation4 + $0x8] sm:$0xff] %vm89_vm0, %v479_v0  ;;  %158 = vmatpush.msra.mxu1 %v141_v7  ;;  %124 = vmatpush.msra.mxu0 %v102_v8 }
  0x1b   :  { %192 = vmatpush.msra.mxu2 %v173_v9  ;;  %283 = vmatpush.msra.mxu3 %v101_v10 }
  0x1c   :  { %279 = vmatmul.msk.f32.vlgmr.msra.gmra.mxu2 %vm89_vm0, %v96_v11  ;;  %159 = vmatpush.msra.mxu1 %v140_v12  ;;  %v138_v15 = vld [vmem:[#allocation3] sm:$0xff] }
  0x1d   :  { %277 = vmatmul.msk.f32.vlgmr.msra.gmra.mxu1 %vm89_vm0, %v96_v11  ;;  %284 = vmatpush.msra.mxu3 %v100_v13  ;;  %v98_v18 = vld [vmem:[#allocation2] sm:$0xff] }
  0x1e   :  { %276 = vmatmul.msk.f32.vlgmr.msra.gmra.mxu3 %vm89_vm0, %v97_v14  ;;  %125 = vmatpush.msra.mxu0 %v101_v10  ;;  %v99_v23 = vld [vmem:[#allocation2 + $0x8] sm:$0xff] }
  0x1f   :  { %v139_v25 = vld [vmem:[#allocation3 + $0x8] sm:$0xff] }
  0x20   :  { %126 = vmatpush.msra.mxu0 %v100_v13  ;;  %v171_v19 = vld [vmem:[#allocation4] sm:$0xff] }
  0x21   :  { %275 = vmatmul.msk.f32.vlgmr.msra.gmra.mxu0 %vm89_vm0, %v96_v11  ;;  %v172_v31 = vld [vmem:[#allocation4 + $0x8] sm:$0xff] }
  0x24   :  { %280 = vmatmul.msk.f32.gmra.mxu2 %vm89_vm0, %v97_v14 }
  0x25   :  { %278 = vmatmul.msk.f32.gmra.mxu1 %vm89_vm0, %v97_v14 }
  0x9a   :  { %v161_v16 = vpop.f32.mrf.mxu1 }
  0x9b   :  { %v167_v17 = vadd.f32 %v161_v16, %v138_v15 }
  0x9d   :  { %169 = vst.msk [vmem:[#allocation3] sm:$0xff] %vm89_vm0, %v167_v17 }
  0x9e   :  { %v128_v20 = vpop.f32.mrf.mxu0 }
  0x9f   :  { %v194_v21 = vpop.f32.mrf.mxu2  ;;  %v134_v22 = vadd.f32 %v128_v20, %v98_v18 }
  0xa0   :  { %v200_v24 = vadd.f32 %v194_v21, %v171_v19 }
  0xa1   :  { %136 = vst.msk [vmem:[#allocation2] sm:$0xff] %vm89_vm0, %v134_v22  ;;  %v131_v26 = vpop.f32.mrf.mxu3 }
  0xa2   :  { %202 = vst.msk [vmem:[#allocation4] sm:$0xff] %vm89_vm0, %v200_v24  ;;  %v164_v27 = vpop.f32.mrf.mxu1  ;;  %v135_v28 = vadd.f32 %v131_v26, %v99_v23 }
  0xa3   :  { %v168_v29 = vadd.f32 %v164_v27, %v139_v25 }
  0xa4   :  { %137 = vst.msk [vmem:[#allocation2 + $0x8] sm:$0xff] %vm89_vm0, %v135_v28  ;;  %v211_v30 = vld [vmem:[#allocation3] sm:$0xff] }
  0xa5   :  { %170 = vst.msk [vmem:[#allocation3 + $0x8] sm:$0xff] %vm89_vm0, %v168_v29 }
  0xa6   :  { %213 = vst.msk [vmem:[#allocation14] sm:$0xff] %vm89_vm0, %v211_v30 }
  0xa7   :  { %v197_v32 = vpop.f32.mrf.mxu2 }
  0xa8   :  { %v201_v33 = vadd.f32 %v197_v32, %v172_v31  ;;  %v207_v34 = vld [vmem:[#allocation2] sm:$0xff] }
  0xa9   :  { %209 = vst.msk [vmem:[#allocation13] sm:$0xff] %vm89_vm0, %v207_v34  ;;  %v215_v35 = vld [vmem:[#allocation4] sm:$0xff] }
  0xaa   :  { %203 = vst.msk [vmem:[#allocation4 + $0x8] sm:$0xff] %vm89_vm0, %v201_v33 }
  0xab   :  { %v208_v36 = vld [vmem:[#allocation2 + $0x8] sm:$0xff]  ;;  %217 = vst.msk [vmem:[#allocation16] sm:$0xff] %vm89_vm0, %v215_v35 }
  0xac   :  { %v212_v37 = vld [vmem:[#allocation3 + $0x8] sm:$0xff]  ;;  %210 = vst.msk [vmem:[#allocation13 + $0x8] sm:$0xff] %vm89_vm0, %v208_v36 }
  0xad   :  { %214 = vst.msk [vmem:[#allocation14 + $0x8] sm:$0xff] %vm89_vm0, %v212_v37  ;;  %231 = dma.vmem_to_hbm [thread:$0]  %s224_s16, 256, %s226_s19, [#allocation7], %s474_s29, %s474_s29, %s475_s30  }
  0xae   :  { %244 = dma.vmem_to_hbm [thread:$0]  %s237_s21, 256, %s239_s24, [#allocation15], %s474_s29, %s474_s29, %s475_s30  }
  0xb1   :  { %v216_v38 = vld [vmem:[#allocation4 + $0x8] sm:$0xff] }
  0xb2   :  { %218 = vst.msk [vmem:[#allocation16 + $0x8] sm:$0xff] %vm89_vm0, %v216_v38 }
  0xb3   :  { %257 = dma.vmem_to_hbm [thread:$0]  %s250_s25, 256, %s252_s27, [#allocation15], %s474_s29, %s474_s29, %s475_s30  }
  0xb4   :  { %469 = dma.done.wait [#allocation7], 256  }
  0xb5   :  { %470 = vsyncadd [#allocation7], 4294967040 }
  0xb6   :  { %471 = dma.done.wait [#allocation15], 512  }
  0xb7   :  { %472 = vsyncadd [#allocation15], 4294966784 }
  0xb8   :  { %270 = vsyncpa [#allocation6], 1 }
  0xb9   :  { %271 = vsyncpa [#allocation9], 1 }
  0xba   :  { %272 = vsyncpa [#allocation12], 1 }
  0xbb   :  { %273 = vsyncpa [#allocation7], 1 }
  0xbc   :  { %274 = vsyncpa [#allocation15], 1 }

</bundles_post_ra>
